<compile_context>
chip_gen: v7x
topology: tpu7x:2x2x1
jax: 0.10.0
libtpu: 0.0.40
codegen_flags: <defaults>
</compile_context>

<pallas_src>
import jax
import jax.numpy as jnp
from jax.experimental import pallas as pl
from jax.experimental.pallas import tpu as pltpu

# ------------------------------------------------------------------ config ---
IN_FEATURES = 32     # encoder input width  (nn default in_features=32)
ENC_HIDDEN = 64      # encoder output width == 'k' of the einsum
CODE_DIM = 128       # columns of D         == 'j' of the einsum, decoder input
OUT_FEATURES = 256   # decoder output width (nn default out_features=256)
BATCH = 256          # example batch; multiple of the batch tile below
TM = 128             # batch tile (rows per grid step) — fills MXU rows in fp32


# ------------------------------------------------------------------ kernel ---
def sae431_kernel(x_ref, we_ref, be_ref, wf_ref, bd_ref, o_ref):
    # Encoder4: h = relu(x @ We + be)
    x = x_ref[...]
    h = jnp.dot(x, we_ref[...], preferred_element_type=jnp.float32) + be_ref[...]
    h = jnp.maximum(h, 0.0)

    # einsum('ik,kj->ij', h, D) followed by Decoder31's Linear is fused:
    #   (h @ D) @ Wd + bd  ==  h @ (D @ Wd) + bd  ==  h @ Wfused + bd
    y = jnp.dot(h, wf_ref[...], preferred_element_type=jnp.float32) + bd_ref[...]

    # Decoder31 activation: sigmoid
    o_ref[...] = jax.nn.sigmoid(y).astype(o_ref.dtype)


def sae431_forward(x, we, be, d, wd, bd):
    n = x.shape[0]
    assert n % TM == 0, "batch must be a multiple of the batch tile"

    # Pre-fuse the einsum matrix with the decoder weight (fp32, done once per call).
    wfused = jnp.dot(d, wd, preferred_element_type=jnp.float32)  # (ENC_HIDDEN, OUT_FEATURES)

    grid = (n // TM,)
    resident = lambda shape: pl.BlockSpec(shape, lambda i: tuple(0 for _ in shape))

    return pl.pallas_call(
        sae431_kernel,
        out_shape=jax.ShapeDtypeStruct((n, OUT_FEATURES), jnp.float32),
        grid=grid,
        in_specs=[
            pl.BlockSpec((TM, IN_FEATURES), lambda i: (i, 0)),   # x: streamed per tile
            resident((IN_FEATURES, ENC_HIDDEN)),                 # We: VMEM-resident
            resident((1, ENC_HIDDEN)),                           # be
            resident((ENC_HIDDEN, OUT_FEATURES)),                # Wfused = D @ Wd
            resident((1, OUT_FEATURES)),                         # bd
        ],
        out_specs=pl.BlockSpec((TM, OUT_FEATURES), lambda i: (i, 0)),
        compiler_params=pltpu.CompilerParams(
            dimension_semantics=("parallel",),                   # lets v7x shard across 2 TCs
        ),
    )(x, we, be, wfused, bd)


# --------------------------------------------------------------- reference ---
def sae431_reference(x, we, be, d, wd, bd):
    h = jnp.maximum(x @ we + be, 0.0)
    code = h @ d
    return jax.nn.sigmoid(code @ wd + bd)


# -------------------------------------------------------------------- main ---
if __name__ == "__main__":
    key = jax.random.PRNGKey(0)
    kx, kd, k1, k2, k3, k4 = jax.random.split(key, 6)

    # deterministic synthetic parameters (shapes implied by the module)
    x = jax.random.normal(kx, (BATCH, IN_FEATURES), dtype=jnp.float32)
    D = jax.random.normal(kd, (ENC_HIDDEN, CODE_DIM), dtype=jnp.float32) * 0.1

    we = jax.random.normal(k1, (IN_FEATURES, ENC_HIDDEN), dtype=jnp.float32) * 0.1
    be = jax.random.normal(k2, (1, ENC_HIDDEN), dtype=jnp.float32) * 0.1
    wd = jax.random.normal(k3, (CODE_DIM, OUT_FEATURES), dtype=jnp.float32) * 0.1
    bd = jax.random.normal(k4, (1, OUT_FEATURES), dtype=jnp.float32) * 0.1

    out = sae431_forward(x, we, be, D, wd, bd)
    out = jax.block_until_ready(out)

    ref = sae431_reference(x, we, be, D, wd, bd)
    assert out.shape == (BATCH, OUT_FEATURES), out.shape
    # Slightly looser tolerance: the D @ Wd pre-fusion reassociates the fp32 sums.
    assert jnp.allclose(out, ref, atol=1e-4, rtol=1e-4), "mismatch vs reference"

    print("KERNEL_OK")
</pallas_src>

<mosaic_0001>
module attributes {stable_mosaic.version = 11 : i64} {
  func.func @sae431_kernel(%arg0: i32, %arg1: memref<128x32xf32, #tpu.memory_space<vmem>>, %arg2: memref<32x64xf32, #tpu.memory_space<vmem>>, %arg3: memref<1x64xf32, #tpu.memory_space<vmem>>, %arg4: memref<64x256xf32, #tpu.memory_space<vmem>>, %arg5: memref<1x256xf32, #tpu.memory_space<vmem>>, %arg6: memref<128x256xf32, #tpu.memory_space<vmem>>) attributes {dimension_semantics = [#tpu.dimension_semantics<parallel>], iteration_bounds = array<i64: 2>, scalar_prefetch = 0 : i64, scratch_operands = 0 : i64, tpu.core_type = #tpu.core_type<tc>, window_params = [{transform_indices = @transform_0, window_bounds = array<i64: 128, 32>}, {pipeline_mode = #tpu.pipeline_mode<synchronous>, transform_indices = @transform_1, window_bounds = array<i64: 32, 64>}, {pipeline_mode = #tpu.pipeline_mode<synchronous>, transform_indices = @transform_2, window_bounds = array<i64: 1, 64>}, {pipeline_mode = #tpu.pipeline_mode<synchronous>, transform_indices = @transform_3, window_bounds = array<i64: 64, 256>}, {pipeline_mode = #tpu.pipeline_mode<synchronous>, transform_indices = @transform_4, window_bounds = array<i64: 1, 256>}, {transform_indices = @transform_5, window_bounds = array<i64: 128, 256>}]} {
    %c0 = arith.constant 0 : index
    %c0_0 = arith.constant 0 : index
    %0 = vector.load %arg1[%c0, %c0_0] : memref<128x32xf32, #tpu.memory_space<vmem>>, vector<128x32xf32>
    %c0_1 = arith.constant 0 : index
    %c0_2 = arith.constant 0 : index
    %1 = vector.load %arg2[%c0_1, %c0_2] : memref<32x64xf32, #tpu.memory_space<vmem>>, vector<32x64xf32>
    %cst = arith.constant dense<0.000000e+00> : vector<128x64xf32>
    %2 = tpu.matmul %0, %1, %cst {dimension_numbers = #tpu.dot_dimension_numbers<[1], [0], [0], [1], [0, 0, 1, 1], [], []>} : vector<128x32xf32>, vector<32x64xf32>, vector<128x64xf32> -> vector<128x64xf32>
    %c0_3 = arith.constant 0 : index
    %c0_4 = arith.constant 0 : index
    %3 = vector.load %arg3[%c0_3, %c0_4] : memref<1x64xf32, #tpu.memory_space<vmem>>, vector<1x64xf32>
    %4 = vector.broadcast %3 : vector<1x64xf32> to vector<128x64xf32>
    %5 = arith.addf %2, %4 : vector<128x64xf32>
    %cst_5 = arith.constant 0.000000e+00 : f32
    %6 = vector.broadcast %cst_5 : f32 to vector<128x64xf32>
    %7 = arith.maximumf %5, %6 : vector<128x64xf32>
    %c0_6 = arith.constant 0 : index
    %c0_7 = arith.constant 0 : index
    %8 = vector.load %arg4[%c0_6, %c0_7] : memref<64x256xf32, #tpu.memory_space<vmem>>, vector<64x256xf32>
    %cst_8 = arith.constant dense<0.000000e+00> : vector<128x256xf32>
    %9 = tpu.matmul %7, %8, %cst_8 {dimension_numbers = #tpu.dot_dimension_numbers<[1], [0], [0], [1], [0, 0, 1, 1], [], []>} : vector<128x64xf32>, vector<64x256xf32>, vector<128x256xf32> -> vector<128x256xf32>
    %c0_9 = arith.constant 0 : index
    %c0_10 = arith.constant 0 : index
    %10 = vector.load %arg5[%c0_9, %c0_10] : memref<1x256xf32, #tpu.memory_space<vmem>>, vector<1x256xf32>
    %11 = vector.broadcast %10 : vector<1x256xf32> to vector<128x256xf32>
    %12 = arith.addf %9, %11 : vector<128x256xf32>
    %13 = arith.negf %12 : vector<128x256xf32>
    %14 = math.exp %13 : vector<128x256xf32>
    %cst_11 = arith.constant 1.000000e+00 : f32
    %15 = vector.broadcast %cst_11 : f32 to vector<128x256xf32>
    %16 = arith.addf %15, %14 : vector<128x256xf32>
    %17 = arith.divf %15, %16 : vector<128x256xf32>
    %c0_12 = arith.constant 0 : index
    %c0_13 = arith.constant 0 : index
    %18 = vector.load %arg6[%c0_12, %c0_13] : memref<128x256xf32, #tpu.memory_space<vmem>>, vector<128x256xf32>
    tpu.vector_store %arg6[%c0_12, %c0_13], %17 {strides = array<i32>} : memref<128x256xf32, #tpu.memory_space<vmem>>, vector<128x256xf32>,
    return
  }
  func.func @transform_0(%arg0: i32) -> (i32, i32) {
    %c0_i32 = arith.constant 0 : i32
    %c0_i32_0 = arith.constant 0 : i32
    return %arg0, %c0_i32 : i32, i32
  }
  func.func @transform_1(%arg0: i32) -> (i32, i32) {
    %c0_i32 = arith.constant 0 : i32
    %c0_i32_0 = arith.constant 0 : i32
    %c0_i32_1 = arith.constant 0 : i32
    return %c0_i32, %c0_i32_0 : i32, i32
  }
  func.func @transform_2(%arg0: i32) -> (i32, i32) {
    %c0_i32 = arith.constant 0 : i32
    %c0_i32_0 = arith.constant 0 : i32
    %c0_i32_1 = arith.constant 0 : i32
    return %c0_i32, %c0_i32_0 : i32, i32
  }
  func.func @transform_3(%arg0: i32) -> (i32, i32) {
    %c0_i32 = arith.constant 0 : i32
    %c0_i32_0 = arith.constant 0 : i32
    %c0_i32_1 = arith.constant 0 : i32
    return %c0_i32, %c0_i32_0 : i32, i32
  }
  func.func @transform_4(%arg0: i32) -> (i32, i32) {
    %c0_i32 = arith.constant 0 : i32
    %c0_i32_0 = arith.constant 0 : i32
    %c0_i32_1 = arith.constant 0 : i32
    return %c0_i32, %c0_i32_0 : i32, i32
  }
  func.func @transform_5(%arg0: i32) -> (i32, i32) {
    %c0_i32 = arith.constant 0 : i32
    %c0_i32_0 = arith.constant 0 : i32
    return %arg0, %c0_i32 : i32, i32
  }
}

</mosaic_0001>

<bundles_post_ra>
// kernel: tpu_custom_call.1
= control target key start
LH: loop header
LB: loop body
LE: loop exit
PB: predicated region body
PF: predicated region fallthrough
CT: control target
= control target key end

     0   :  { %10 = vsyncpa [#allocation3], 0  ;;  %s1761_s0 = inlined_call_operand.vmem [shape: f32[256,32], index: 0, kind: input, shape index: {}]   ;;  %s1762_s1 = inlined_call_operand.vmem [shape: f32[32,64], index: 1, kind: input, shape index: {}]   ;;  %s1763_s2 = inlined_call_operand.vmem [shape: f32[1,64], index: 2, kind: input, shape index: {}]   ;;  %s1764_s3 = inlined_call_operand.vmem [shape: f32[64,256], index: 3, kind: input, shape index: {}]   ;;  %s1765_s4 = inlined_call_operand.vmem [shape: f32[1,256], index: 4, kind: input, shape index: {}]   ;;  %s1766_s5 = inlined_call_operand.hbm [shape: f32[256,256], index: 5, kind: output, shape index: {}]  }
   0x1   :  { %12 = vsyncpa [#allocation3 + $0x1], 0  ;;  %s1434_s18 = smov 0   ;;  %s1436_s19 = smov 0  }
   0x2   :  { %s1438_s20 = smov 0   ;;  %s1440_s21 = smov 0  }
   0x3 LB: > { %s1455_s22 = sadd.s32 4294967295, %s1398_s21   ;;  %s1002_s23 = sadd.s32 4294967294, %s1398_s21   ;;  %s1398_s21 = sphi %s1440_s21, %s1772_s21   ;;  %s1394_s20 = sphi %s1438_s20, %s1771_s20   ;;  %s1390_s19 = sphi %s1436_s19, %s1770_s19   ;;  %s1386_s18 = sphi %s1434_s18, %s1769_s18  }
   0x4   : > { %s1459_s24 = sadd.s32 1, %s1398_s21   ;;  %s135_s25 = sadd.s32 1, %s1394_s20 }
   0x5   : > { %s132_s26 = ssub.s32 %s1398_s21, %s1459_s24  ;;  %p145_p0 = scmp.ne.s32.totalorder %s1394_s20, %s1390_s19 }
   0x6   : > { %p133_p1 = scmp.eq.s32.totalorder %s132_s26, 0  ;;  %p146_p2 = scmp.eq.s32.totalorder %s1455_s22, 1 }
   0x7   : > { %p151_p3 = scmp.ne.s32.totalorder %s1390_s19, %s1386_s18  ;;  %p152_p4 = scmp.eq.s32.totalorder %s1002_s23, 1 }
   0x8   : > { %s1470_s27 = scalar_select %p133_p1, %s1394_s20, %s135_s25  }
   0x9   : > { %p1472_p5 = por %p146_p2, %p145_p0  ;;  %p1476_p6 = por %p152_p4, %p151_p3 }
   0xa   : > { %p1005_p7 = scmp.ge.s32.totalorder %s1398_s21, 1  ;;  %p191_p8 = scmp.lt.s32.totalorder %s1398_s21, 3 }
   0xc   : > { %p192_p9 = pnand %p1005_p7, %p191_p8 }
   0xd   : > { %v242_v0 = vld [vmem:[%s1762_s1] sm:$0xff] (!%p192_p9)  ;;  %v243_v1 = vld [vmem:[%s1762_s1 + $0x8] sm:$0xff] (!%p192_p9)  ;;  %v244_v2 = vld [vmem:[%s1762_s1 + $0x10] sm:$0xff] (!%p192_p9)  ;;  %s1007_s11 = sshll.u32 (!%p192_p9), %s1455_s22, 4  ;;  %vm253_vm0 = vcmask (!%p192_p9), 261120   ;;  %v1400_v46 = vmov (!%p192_p9), 0.0  }
   0xe   : > { %195 = sbr.rel (%p192_p9) target bundleno = 558 (0x22e), region = 40  ;;  %v1134_v3 = vpack.c.bf16 (!%p192_p9), %v243_v1, %v242_v0  ;;  %v245_v4 = vld [vmem:[%s1762_s1 + $0x18] sm:$0xff] (!%p192_p9)  ;;  %p220_p10 = scmp.lt.s32.totalorder (!%p192_p9), %s1007_s11, 31  ;;  %v464_v5 = vld [vmem:[%s1764_s3 + $0x8] sm:$0xff] (!%p192_p9)  ;;  %v463_v9 = vld [vmem:[%s1764_s3] sm:$0xff] (!%p192_p9)  ;;  %634 = vmatprep.mubr.f32.mxu1 (!%p192_p9), %v1400_v46  ;;  %vm491_vm1 = vcmask (!%p192_p9), 523264  }
   0xf   : > { %v466_v6 = vld [vmem:[%s1764_s3 + $0x18] sm:$0xff] (!%p192_p9)  ;;  %v1138_v7 = vpack.c.bf16 (!%p192_p9), %v245_v4, %v244_v2  ;;  %v465_v10 = vld [vmem:[%s1764_s3 + $0x10] sm:$0xff] (!%p192_p9)  ;;  %v468_v11 = vld [vmem:[%s1764_s3 + $0x28] sm:$0xff] (!%p192_p9)  ;;  %s1081_s9 = sshll.u32 (!%p192_p9), %s1455_s22, 12  ;;  %s1401_s16 = smov (!%p192_p9), [#allocation2]  }
  0x10   : > { %v1142_v8 = vpack.c.bf16 (!%p192_p9), %v466_v6, %v464_v5  ;;  %1135 = vmatprep.subr.bf16.mxu0 (!%p192_p9), %v1134_v3  ;;  %v1144_v12 = vpack.c.bf16 (!%p192_p9), %v465_v10, %v463_v9  ;;  %v470_v13 = vld [vmem:[%s1764_s3 + $0x38] sm:$0xff] (!%p192_p9)  ;;  %v467_v15 = vld [vmem:[%s1764_s3 + $0x20] sm:$0xff] (!%p192_p9)  ;;  %v469_v16 = vld [vmem:[%s1764_s3 + $0x30] sm:$0xff] (!%p192_p9)  ;;  %s1712_s14 = scalar_lea.hbm (!%p192_p9), %s1766_s5, %s1081_s9  ;;  %s1340_s17 = sshll.u32 (!%p192_p9), %s1401_s16, 4  ;;  %s1341_s17 = int_to_ptr.vmem [resolvable:$false] %s1340_s17 }
  0x11   : > { %1137 = vmatpush3.bf16.msra.mxu0 (!%p192_p9), %v1134_v3  ;;  %v1146_v14 = vpack.c.bf16 (!%p192_p9), %v470_v13, %v468_v11  ;;  %v472_v17 = vld [vmem:[%s1764_s3 + $0x48] sm:$0xff] (!%p192_p9)  ;;  %v474_v18 = vld [vmem:[%s1764_s3 + $0x58] sm:$0xff] (!%p192_p9)  ;;  %v1148_v20 = vpack.c.bf16 (!%p192_p9), %v469_v16, %v467_v15  ;;  %v471_v23 = vld [vmem:[%s1764_s3 + $0x40] sm:$0xff] (!%p192_p9)  ;;  %s1342_s23 = scalar_lea.vmem (!%p192_p9), %s1341_s17, 8192 }
  0x12   : > { %1158 = vmatprep.subr.bf16.mxu1 (!%p192_p9), %v1142_v8  ;;  %1139 = vmatprep.subr.bf16.mxu0 (!%p192_p9), %v1138_v7  ;;  %v1150_v22 = vpack.c.bf16 (!%p192_p9), %v474_v18, %v472_v17  ;;  %v473_v24 = vld [vmem:[%s1764_s3 + $0x50] sm:$0xff] (!%p192_p9)  ;;  %v476_v40 = vld [vmem:[%s1764_s3 + $0x68] sm:$0xff] (!%p192_p9)  ;;  %v478_v41 = vld [vmem:[%s1764_s3 + $0x78] sm:$0xff] (!%p192_p9) }
  0x13   : > { %1162 = vmatpush1.bf16.msra.mxu1 (!%p192_p9), %v1144_v12  ;;  %v1152_v26 = vpack.c.bf16 (!%p192_p9), %v473_v24, %v471_v23  ;;  %v1154_v42 = vpack.c.bf16 (!%p192_p9), %v478_v41, %v476_v40  ;;  %v475_v43 = vld [vmem:[%s1764_s3 + $0x60] sm:$0xff] (!%p192_p9)  ;;  %v477_v44 = vld [vmem:[%s1764_s3 + $0x70] sm:$0xff] (!%p192_p9) }
  0x14   : > { %1159 = vmatprep.subr.bf16.mxu1 (!%p192_p9), %v1146_v14  ;;  %v1156_v45 = vpack.c.bf16 (!%p192_p9), %v477_v44, %v475_v43  ;;  %v1585_v47 = vld [vmem:[%s1763_s2] ss:$0 sm:$0xff] (!%p192_p9) }
  0x15   : > { %s1774_s11 = smov (!%p220_p10, %s1007_s11), 31  ;;  %1141 = vmatpush3.bf16.msra.mxu0 %v1138_v7 }
  0x16   : > { %s1008_s15 = sshll.u32 %s1774_s11, 3  ;;  %1143 = vmatprep.subr.bf16.mxu0 %v1142_v8  ;;  %s216_s11 = sand.u32 1, %s1390_s19  }
  0x17   : > { %s1528_s6 = scalar_lea.vmem %s1761_s0, %s1008_s15  ;;  %1163 = vmatpush1.bf16.msra.mxu1 %v1148_v20  ;;  %s1006_s7 = sshll.u32 %s216_s11, 8 }
  0x18   : > { %v226_v19 = vld [vmem:[%s1528_s6] sm:$0xff]  ;;  %v227_v21 = vld [vmem:[%s1528_s6 + $0x8] sm:$0xff]  ;;  %v228_v25 = vld [vmem:[%s1528_s6 + $0x10] sm:$0xff]  ;;  %1160 = vmatprep.subr.bf16.mxu1 %v1150_v22  ;;  %s1660_s8 = scalar_lea.vmem [#allocation2], %s1006_s7  ;;  %s1720_s22 = scalar_lea.sflag [#allocation3], %s216_s11 }
  0x19   : > { %1110 = vmatprep.mubr.msk.f32.mxu0 %vm253_vm0, %v226_v19  ;;  %v229_v27 = vld [vmem:[%s1528_s6 + $0x18] sm:$0xff]  ;;  %v230_v28 = vld [vmem:[%s1528_s6 + $0x20] sm:$0xff]  ;;  %v231_v29 = vld [vmem:[%s1528_s6 + $0x28] sm:$0xff]  ;;  %s940_s10 = sshll.u32 %s1660_s8, 4  ;;  %s1714_s10 = int_to_ptr.vmem [resolvable:$true] %s940_s10 }
  0x1a   : > { %1111 = vmatmul.mubr.msk.f32.vlgmr.msra.gmra.mrb[0].mxu0 %vm253_vm0, %v227_v21  ;;  %v232_v30 = vld [vmem:[%s1528_s6 + $0x30] sm:$0xff]  ;;  %v233_v31 = vld [vmem:[%s1528_s6 + $0x38] sm:$0xff]  ;;  %v234_v32 = vld [vmem:[%s1528_s6 + $0x40] sm:$0xff]  ;;  %s1336_s15 = scalar_lea.vmem %s1714_s10, 4096  ;;  %p1343_p0 = scmp.lt.s32.totalorder %s1714_s10, %s1341_s17 }
  0x1b   : > { %1113 = vmatprep.mubr.msk.f32.mxu0 %vm253_vm0, %v228_v25  ;;  %1145 = vmatpush1.bf16.msra.mxu0 %v1144_v12  ;;  %v235_v33 = vld [vmem:[%s1528_s6 + $0x48] sm:$0xff]  ;;  %v236_v34 = vld [vmem:[%s1528_s6 + $0x50] sm:$0xff]  ;;  %v237_v35 = vld [vmem:[%s1528_s6 + $0x58] sm:$0xff]  ;;  %p1337_p11 = scmp.ne.s32.totalorder %s1714_s10, %s1336_s15  ;;  %p1344_p1 = scmp.lt.s32.totalorder %s1342_s23, %s1336_s15 }
  0x1c   : > { %1147 = vmatprep.subr.bf16.mxu0 %v1146_v14  ;;  %1164 = vmatpush1.bf16.msra.mxu1 %v1152_v26  ;;  %v238_v36 = vld [vmem:[%s1528_s6 + $0x60] sm:$0xff]  ;;  %v239_v37 = vld [vmem:[%s1528_s6 + $0x68] sm:$0xff]  ;;  %v240_v38 = vld [vmem:[%s1528_s6 + $0x70] sm:$0xff] }
  0x1d   : > { %v241_v39 = vld [vmem:[%s1528_s6 + $0x78] sm:$0xff]  ;;  %1161 = vmatprep.subr.bf16.mxu1 %v1154_v42  ;;  %p1338_p12 = pnand %p1337_p11, %p1472_p5  ;;  %p1345_p2 = por %p1344_p1, %p1343_p0 }
  0x1e   : > { %1114 = vmatmul.mubr.msk.f32.gmra.mrb[2].mxu0 %vm253_vm0, %v229_v27 }
  0x1f   : > { %1116 = vmatprep.mubr.msk.f32.mxu0 %vm253_vm0, %v230_v28  ;;  %1149 = vmatpush1.bf16.msra.mxu0 %v1148_v20  ;;  %p1339_p13 = pneg %p1338_p12 }
  0x20   : > { %1151 = vmatprep.subr.bf16.mxu0 %v1150_v22  ;;  %1165 = vmatpush1.bf16.msra.mxu1 %v1156_v45 }
  0x21   : > { %p1346_p3 = pnand %p1345_p2, %p1339_p13 }
  0x22   : > { %1117 = vmatmul.mubr.msk.f32.gmra.mrb[4].mxu0 %vm253_vm0, %v231_v29 }
  0x23   : > { %1119 = vmatprep.mubr.msk.f32.mxu0 %vm253_vm0, %v232_v30  ;;  %1153 = vmatpush1.bf16.msra.mxu0 %v1152_v26 }
  0x24   : > { %1155 = vmatprep.subr.bf16.mxu0 %v1154_v42 }
  0x26   : > { %1120 = vmatmul.mubr.msk.f32.gmra.mrb[6].mxu0 %vm253_vm0, %v233_v31 }
  0x27   : > { %1122 = vmatprep.mubr.msk.f32.mxu0 %vm253_vm0, %v234_v32  ;;  %1157 = vmatpush1.bf16.msra.mxu0 %v1156_v45  ;;  %v481_v32 = vlaneseq }
  0x2a   : > { %1123 = vmatmul.mubr.msk.f32.gmra.mrb[8].mxu0 %vm253_vm0, %v235_v33  ;;  %v482_v33 = vshrl.u32 %v481_v32, 7 }
  0x2b   : > { %1125 = vmatprep.mubr.msk.f32.mxu0 %vm253_vm0, %v236_v34 }
  0x2c   : > { %v483_v34 = vsub.s32 0, %v482_v33 }
  0x2e   : > { %1126 = vmatmul.mubr.msk.f32.gmra.mrb[10].mxu0 %vm253_vm0, %v237_v35  ;;  %v479_v35 = vld [vmem:[%s1765_s4] sm:$0x3] }
  0x2f   : > { %1128 = vmatprep.mubr.msk.f32.mxu0 %vm253_vm0, %v238_v36  ;;  %v487_v36 = vsub.s32 1, %v482_v33 }
  0x32   : > { %1129 = vmatmul.mubr.msk.f32.gmra.mrb[12].mxu0 %vm253_vm0, %v239_v37  ;;  %v1636_v37 = vrot.slane %v479_v35, %v483_v34 }
  0x33   : > { %1131 = vmatprep.mubr.msk.f32.mxu0 %vm253_vm0, %v240_v38  ;;  %v1638_v38 = vrot.slane %v479_v35, %v487_v36 }
  0x36   : > { %1132 = vmatmul.mubr.msk.f32.gmra.mrb[14].mxu0 %vm253_vm0, %v241_v39 }
  0x37   : > { %604 = vmatprep.mubr.f32.mxu0 %v1400_v46 }
  0xed   : > { %v1112_v48 = vpop.f32.mrb[0].mxu0 }
  0xee   : > { %v368_v49 = vpop.f32.mrb[1].mxu0  ;;  %v374_v51 = vadd.f32 %v1112_v48, %v1585_v47 }
  0xef   : > { %v369_v50 = vadd.f32 %v1585_v47, %v368_v49 }
  0xf0   : > { %v448_v55 = vmax.f32 %v374_v51, 0.0 }
  0xf1   : > { %v447_v52 = vmax.f32 %v369_v50, 0.0  ;;  %v1115_v53 = vpop.f32.mrb[2].mxu0 }
  0xf2   : > { %v378_v54 = vpop.f32.mrb[3].mxu0  ;;  %v384_v61 = vadd.f32 %v1115_v53, %v1585_v47 }
  0xf3   : > { %1026 = vmatmul.mubr.msk.f32.vlgmr.msra.gmra.mrb[16].mxu0 %vm491_vm1, %v447_v52  ;;  %v379_v56 = vadd.f32 %v1585_v47, %v378_v54 }
  0xf4   : > { %610 = vmatprep.mubr.f32.mxu0 %v1400_v46  ;;  %v450_v2 = vmax.f32 %v384_v61, 0.0 }
  0xf5   : > { %v1118_v57 = vpop.f32.mrb[4].mxu0  ;;  %v449_v62 = vmax.f32 %v379_v56, 0.0 }
  0xf6   : > { %v394_v58 = vadd.f32 %v1118_v57, %v1585_v47  ;;  %v388_v59 = vpop.f32.mrb[5].mxu0 }
  0xf7   : > { %1027 = vmatmul.mubr.msk.f32.gmra.mrb[18].mxu0 %vm491_vm1, %v448_v55  ;;  %v389_v3 = vadd.f32 %v1585_v47, %v388_v59 }
  0xf8   : > { %v452_v60 = vmax.f32 %v394_v58, 0.0  ;;  %616 = vmatprep.mubr.f32.mxu0 %v1400_v46 }
  0xf9   : > { %v1121_v63 = vpop.f32.mrb[6].mxu0  ;;  %v451_v9 = vmax.f32 %v389_v3, 0.0 }
  0xfa   : > { %v398_v0 = vpop.f32.mrb[7].mxu0  ;;  %1031 = vmatmul.mubr.msk.f32.vlgmr.msra.gmra.mrb[0].mxu1 %vm491_vm1, %v452_v60  ;;  %v404_v4 = vadd.f32 %v1121_v63, %v1585_v47 }
  0xfb   : > { %v399_v1 = vadd.f32 %v1585_v47, %v398_v0  ;;  %1028 = vmatmul.mubr.msk.f32.gmra.mrb[20].mxu0 %vm491_vm1, %v449_v62  ;;  %640 = vmatprep.mubr.f32.mxu1 %v1400_v46 }
  0xfc   : > { %622 = vmatprep.mubr.f32.mxu0 %v1400_v46  ;;  %v454_v10 = vmax.f32 %v404_v4, 0.0 }
  0xfd   : > { %v453_v5 = vmax.f32 %v399_v1, 0.0  ;;  %v1124_v6 = vpop.f32.mrb[8].mxu0 }
  0xfe   : > { %v408_v7 = vpop.f32.mrb[9].mxu0  ;;  %v414_v14 = vadd.f32 %v1124_v6, %v1585_v47 }
  0xff   : > { %1029 = vmatmul.mubr.msk.f32.gmra.mrb[22].mxu0 %vm491_vm1, %v450_v2  ;;  %1032 = vmatmul.mubr.msk.f32.gmra.mrb[2].mxu1 %vm491_vm1, %v453_v5  ;;  %v409_v8 = vadd.f32 %v1585_v47, %v408_v7 }
 0x100   : > { %628 = vmatprep.mubr.f32.mxu0 %v1400_v46  ;;  %646 = vmatprep.mubr.f32.mxu1 %v1400_v46  ;;  %v456_v18 = vmax.f32 %v414_v14, 0.0 }
 0x101   : > { %v1127_v11 = vpop.f32.mrb[10].mxu0  ;;  %v455_v13 = vmax.f32 %v409_v8, 0.0 }
 0x102   : > { %v418_v12 = vpop.f32.mrb[11].mxu0  ;;  %v424_v22 = vadd.f32 %v1127_v11, %v1585_v47 }
 0x103   : > { %1030 = vmatmul.mubr.msk.f32.gmra.mrb[24].mxu0 %vm491_vm1, %v451_v9  ;;  %1033 = vmatmul.mubr.msk.f32.gmra.mrb[4].mxu1 %vm491_vm1, %v454_v10  ;;  %v419_v17 = vadd.f32 %v1585_v47, %v418_v12 }
 0x104   : > { %652 = vmatprep.mubr.f32.mxu1 %v1400_v46  ;;  %v458_v24 = vmax.f32 %v424_v22, 0.0 }
 0x105   : > { %v1130_v15 = vpop.f32.mrb[12].mxu0  ;;  %v457_v21 = vmax.f32 %v419_v17, 0.0 }
 0x106   : > { %v428_v16 = vpop.f32.mrb[13].mxu0  ;;  %v434_v26 = vadd.f32 %v1130_v15, %v1585_v47 }
 0x107   : > { %1034 = vmatmul.mubr.msk.f32.gmra.mrb[6].mxu1 %vm491_vm1, %v455_v13  ;;  %v429_v23 = vadd.f32 %v1585_v47, %v428_v16 }
 0x108   : > { %658 = vmatprep.mubr.f32.mxu1 %v1400_v46  ;;  %v460_v28 = vmax.f32 %v434_v26, 0.0 }
 0x109   : > { %v1133_v19 = vpop.f32.mrb[14].mxu0  ;;  %v459_v25 = vmax.f32 %v429_v23, 0.0 }
 0x10a   : > { %v438_v20 = vpop.f32.mrb[15].mxu0  ;;  %v444_v30 = vadd.f32 %v1133_v19, %v1585_v47 }
 0x10b   : > { %1035 = vmatmul.mubr.msk.f32.gmra.mrb[8].mxu1 %vm491_vm1, %v456_v18  ;;  %v439_v27 = vadd.f32 %v1585_v47, %v438_v20 }
 0x10c   : > { %664 = vmatprep.mubr.f32.mxu1 %v1400_v46  ;;  %v462_v31 = vmax.f32 %v444_v30, 0.0 }
 0x10d   : > { %v461_v29 = vmax.f32 %v439_v27, 0.0 }
 0x10f   : > { %1036 = vmatmul.mubr.msk.f32.gmra.mrb[10].mxu1 %vm491_vm1, %v457_v21 }
 0x110   : > { %670 = vmatprep.mubr.f32.mxu1 %v1400_v46 }
 0x113   : > { %1037 = vmatmul.mubr.msk.f32.gmra.mrb[12].mxu1 %vm491_vm1, %v458_v24 }
 0x114   : > { %676 = vmatprep.mubr.f32.mxu1 %v1400_v46 }
 0x117   : > { %1038 = vmatmul.mubr.msk.f32.gmra.mrb[14].mxu1 %vm491_vm1, %v459_v25 }
 0x118   : > { %682 = vmatprep.mubr.f32.mxu1 %v1400_v46 }
 0x11b   : > { %1039 = vmatmul.mubr.msk.f32.gmra.mrb[16].mxu1 %vm491_vm1, %v460_v28 }
 0x11c   : > { %688 = vmatprep.mubr.f32.mxu1 %v1400_v46 }
 0x11f   : > { %1040 = vmatmul.mubr.msk.f32.gmra.mrb[18].mxu1 %vm491_vm1, %v461_v29 }
 0x120   : > { %694 = vmatprep.mubr.f32.mxu1 %v1400_v46 }
 0x123   : > { %1041 = vmatmul.mubr.msk.f32.gmra.mrb[20].mxu1 %vm491_vm1, %v462_v31 }
 0x1c6   : > { %v606_v39 = vpop.f32.mrb[16].mxu0 }
 0x1c7   : > { %v607_v40 = vadd.f32 %v606_v39, %v1636_v37  ;;  %v608_v41 = vpop.f32.mrb[17].mxu0 }
 0x1c8   : > { %v609_v42 = vadd.f32 %v608_v41, %v1638_v38 }
 0x1c9   : > { %v1042_v43 = vmul.f32 -1.442695, %v607_v40 }
 0x1ca   : > { %v1043_v44 = vmul.f32 -1.442695, %v609_v42  ;;  %v612_v45 = vpop.f32.mrb[18].mxu0 }
 0x1cb   : > { %1208 = vpow2.f32 %v1042_v43  ;;  %v613_v46 = vadd.f32 %v612_v45, %v1636_v37  ;;  %v614_v47 = vpop.f32.mrb[19].mxu0 }
 0x1cc   : > { %1210 = vpow2.f32 %v1043_v44  ;;  %v615_v48 = vadd.f32 %v614_v47, %v1638_v38 }
 0x1cd   : > { %v1044_v49 = vmul.f32 -1.442695, %v613_v46  ;;  %v636_v50 = vpop.f32.mrb[0].mxu1 }
 0x1ce   : > { %v1045_v51 = vmul.f32 -1.442695, %v615_v48  ;;  %v637_v52 = vadd.f32 %v636_v50, %v1636_v37  ;;  %v618_v53 = vpop.f32.mrb[20].mxu0  ;;  %v638_v54 = vpop.f32.mrb[1].mxu1 }
 0x1cf   : > { %1212 = vpow2.f32 %v1044_v49  ;;  %v619_v55 = vadd.f32 %v618_v53, %v1636_v37  ;;  %v639_v56 = vadd.f32 %v638_v54, %v1638_v38  ;;  %v620_v57 = vpop.f32.mrb[21].mxu0 }
 0x1d0   : > { %1214 = vpow2.f32 %v1045_v51  ;;  %v1052_v58 = vmul.f32 -1.442695, %v637_v52  ;;  %v621_v59 = vadd.f32 %v620_v57, %v1638_v38 }
 0x1d1   : > { %v1046_v60 = vmul.f32 -1.442695, %v619_v55  ;;  %v1053_v61 = vmul.f32 -1.442695, %v639_v56 }
 0x1d2   : > { %1216 = vpow2.f32 %v1052_v58  ;;  %v1047_v62 = vmul.f32 -1.442695, %v621_v59  ;;  %v624_v63 = vpop.f32.mrb[22].mxu0  ;;  %v642_v0 = vpop.f32.mrb[2].mxu1 }
 0x1d3   : > { %1218 = vpow2.f32 %v1046_v60  ;;  %v625_v1 = vadd.f32 %v624_v63, %v1636_v37  ;;  %v643_v2 = vadd.f32 %v642_v0, %v1636_v37  ;;  %v626_v3 = vpop.f32.mrb[23].mxu0  ;;  %v644_v4 = vpop.f32.mrb[3].mxu1 }
 0x1d4   : > { %1220 = vpow2.f32 %v1053_v61  ;;  %v627_v5 = vadd.f32 %v626_v3, %v1638_v38  ;;  %v645_v11 = vadd.f32 %v644_v4, %v1638_v38 }
 0x1d5   : > { %v1209_v6 = vpop.eup %1208  ;;  %1222 = vpow2.f32 %v1047_v62  ;;  %v1048_v7 = vmul.f32 -1.442695, %v625_v1  ;;  %v1054_v10 = vmul.f32 -1.442695, %v643_v2 }
 0x1d6   : > { %v1211_v8 = vpop.eup %1210  ;;  %v797_v9 = vadd.f32 1.0, %v1209_v6  ;;  %v630_v12 = vpop.f32.mrb[24].mxu0  ;;  %v1049_v14 = vmul.f32 -1.442695, %v627_v5  ;;  %v1055_v21 = vmul.f32 -1.442695, %v645_v11 }
 0x1d7   : > { %v798_v13 = vadd.f32 1.0, %v1211_v8  ;;  %1224 = vpow2.f32 %v1048_v7  ;;  %v648_v15 = vpop.f32.mrb[4].mxu1  ;;  %v632_v16 = vpop.f32.mrb[25].mxu0  ;;  %v631_v24 = vadd.f32 %v630_v12, %v1636_v37 }
 0x1d8   : > { %1226 = vrcp.f32 %v797_v9  ;;  %v650_v17 = vpop.f32.mrb[5].mxu1  ;;  %v649_v29 = vadd.f32 %v648_v15, %v1636_v37  ;;  %v633_v32 = vadd.f32 %v632_v16, %v1638_v38 }
 0x1d9   : > { %v1213_v18 = vpop.eup %1212  ;;  %1228 = vrcp.f32 %v798_v13  ;;  %v1050_v36 = vmul.f32 -1.442695, %v631_v24  ;;  %v651_v43 = vadd.f32 %v650_v17, %v1638_v38 }
 0x1da   : > { %v1215_v19 = vpop.eup %1214  ;;  %v799_v20 = vadd.f32 1.0, %v1213_v18  ;;  %1230 = vpow2.f32 %v1054_v10  ;;  %v654_v22 = vpop.f32.mrb[6].mxu1  ;;  %v1056_v42 = vmul.f32 -1.442695, %v649_v29  ;;  %v1051_v46 = vmul.f32 -1.442695, %v633_v32 }
 0x1db   : > { %v800_v23 = vadd.f32 1.0, %v1215_v19  ;;  %1232 = vpow2.f32 %v1049_v14  ;;  %v656_v25 = vpop.f32.mrb[7].mxu1  ;;  %v655_v47 = vadd.f32 %v654_v22, %v1636_v37  ;;  %v1057_v55 = vmul.f32 -1.442695, %v651_v43 }
 0x1dc   : > { %v1217_v26 = vpop.eup %1216  ;;  %1234 = vrcp.f32 %v799_v20  ;;  %v657_v52 = vadd.f32 %v656_v25, %v1638_v38 }
 0x1dd   : > { %v1219_v27 = vpop.eup %1218  ;;  %1236 = vrcp.f32 %v800_v23  ;;  %v807_v28 = vadd.f32 1.0, %v1217_v26  ;;  %v1058_v59 = vmul.f32 -1.442695, %v655_v47 }
 0x1de   : > { %v1221_v30 = vpop.eup %1220  ;;  %v801_v31 = vadd.f32 1.0, %v1219_v27  ;;  %1238 = vpow2.f32 %v1055_v21  ;;  %v660_v33 = vpop.f32.mrb[8].mxu1  ;;  %v1059_v2 = vmul.f32 -1.442695, %v657_v52 }
 0x1df   : > { %v1223_v34 = vpop.eup %1222  ;;  %1240 = vrcp.f32 %v807_v28  ;;  %v808_v35 = vadd.f32 1.0, %v1221_v30  ;;  %v662_v39 = vpop.f32.mrb[9].mxu1  ;;  %v661_v56 = vadd.f32 %v660_v33, %v1636_v37 }
 0x1e0   : > { %1242 = vrcp.f32 %v801_v31  ;;  %v802_v40 = vadd.f32 1.0, %v1223_v34  ;;  %v663_v60 = vadd.f32 %v662_v39, %v1638_v38 }
 0x1e1   : > { %v1225_v41 = vpop.eup %1224  ;;  %1244 = vrcp.f32 %v808_v35  ;;  %v1060_v5 = vmul.f32 -1.442695, %v661_v56 }
 0x1e2   : > { %v1227_v44 = vpop.eup %1226  ;;  %1246 = vrcp.f32 %v802_v40  ;;  %v803_v45 = vadd.f32 1.0, %v1225_v41  ;;  %v666_v48 = vpop.f32.mrb[10].mxu1  ;;  %v1061_v8 = vmul.f32 -1.442695, %v663_v60 }
 0x1e3   : > { %v1229_v49 = vpop.eup %1228  ;;  %893 = vst [vmem:[%s1660_s8] sm:$0xff] %v1227_v44  ;;  %1248 = vpow2.f32 %v1050_v36  ;;  %v668_v50 = vpop.f32.mrb[11].mxu1  ;;  %v667_v63 = vadd.f32 %v666_v48, %v1636_v37 }
 0x1e4   : > { %v1231_v51 = vpop.eup %1230  ;;  %894 = vst [vmem:[%s1660_s8 + $0x8] sm:$0xff] %v1229_v49  ;;  %1250 = vrcp.f32 %v803_v45  ;;  %v669_v6 = vadd.f32 %v668_v50, %v1638_v38 }
 0x1e5   : > { %v1233_v53 = vpop.eup %1232  ;;  %v809_v54 = vadd.f32 1.0, %v1231_v51  ;;  %1252 = vpow2.f32 %v1056_v42  ;;  %v1062_v11 = vmul.f32 -1.442695, %v667_v63 }
 0x1e6   : > { %v1235_v57 = vpop.eup %1234  ;;  %v804_v58 = vadd.f32 1.0, %v1233_v53  ;;  %1254 = vpow2.f32 %v1051_v46  ;;  %v672_v61 = vpop.f32.mrb[12].mxu1  ;;  %v1063_v16 = vmul.f32 -1.442695, %v669_v6 }
 0x1e7   : > { %v1237_v62 = vpop.eup %1236  ;;  %895 = vst [vmem:[%s1660_s8 + $0x10] sm:$0xff] %v1235_v57  ;;  %1256 = vrcp.f32 %v809_v54  ;;  %v674_v0 = vpop.f32.mrb[13].mxu1  ;;  %v673_v14 = vadd.f32 %v672_v61, %v1636_v37 }
 0x1e8   : > { %v1239_v1 = vpop.eup %1238  ;;  %896 = vst [vmem:[%s1660_s8 + $0x18] sm:$0xff] %v1237_v62  ;;  %1258 = vrcp.f32 %v804_v58  ;;  %v675_v17 = vadd.f32 %v674_v0, %v1638_v38 }
 0x1e9   : > { %v1241_v3 = vpop.eup %1240  ;;  %v810_v4 = vadd.f32 1.0, %v1239_v1  ;;  %1260 = vpow2.f32 %v1057_v55  ;;  %v1064_v25 = vmul.f32 -1.442695, %v673_v14 }
 0x1ea   : > { %v1243_v7 = vpop.eup %1242  ;;  %903 = vst [vmem:[%s1660_s8 + $0x50] sm:$0xff] %v1241_v3  ;;  %1262 = vpow2.f32 %v1058_v59  ;;  %v678_v9 = vpop.f32.mrb[14].mxu1  ;;  %v1065_v29 = vmul.f32 -1.442695, %v675_v17 }
 0x1eb   : > { %v1245_v10 = vpop.eup %1244  ;;  %897 = vst [vmem:[%s1660_s8 + $0x20] sm:$0xff] %v1243_v7  ;;  %1264 = vrcp.f32 %v810_v4  ;;  %v680_v12 = vpop.f32.mrb[15].mxu1  ;;  %v679_v26 = vadd.f32 %v678_v9, %v1636_v37 }
 0x1ec   : > { %v1247_v13 = vpop.eup %1246  ;;  %904 = vst [vmem:[%s1660_s8 + $0x58] sm:$0xff] %v1245_v10  ;;  %1266 = vpow2.f32 %v1059_v2  ;;  %v681_v41 = vadd.f32 %v680_v12, %v1638_v38 }
 0x1ed   : > { %v1249_v15 = vpop.eup %1248  ;;  %898 = vst [vmem:[%s1660_s8 + $0x28] sm:$0xff] %v1247_v13  ;;  %1268 = vpow2.f32 %v1060_v5  ;;  %v1066_v36 = vmul.f32 -1.442695, %v679_v26 }
 0x1ee   : > { %v1251_v18 = vpop.eup %1250  ;;  %v805_v19 = vadd.f32 1.0, %v1249_v15  ;;  %1270 = vpow2.f32 %v1061_v8  ;;  %v684_v20 = vpop.f32.mrb[16].mxu1  ;;  %v1067_v53 = vmul.f32 -1.442695, %v681_v41 }
 0x1ef   : > { %v1253_v21 = vpop.eup %1252  ;;  %899 = vst [vmem:[%s1660_s8 + $0x30] sm:$0xff] %v1251_v18  ;;  %1272 = vpow2.f32 %v1062_v11  ;;  %v686_v22 = vpop.f32.mrb[17].mxu1  ;;  %v685_v46 = vadd.f32 %v684_v20, %v1636_v37 }
 0x1f0   : > { %v1255_v23 = vpop.eup %1254  ;;  %1274 = vrcp.f32 %v805_v19  ;;  %v811_v24 = vadd.f32 1.0, %v1253_v21  ;;  %v687_v50 = vadd.f32 %v686_v22, %v1638_v38 }
 0x1f1   : > { %v1257_v27 = vpop.eup %1256  ;;  %v806_v28 = vadd.f32 1.0, %v1255_v23  ;;  %1276 = vpow2.f32 %v1063_v16  ;;  %v1068_v57 = vmul.f32 -1.442695, %v685_v46 }
 0x1f2   : > { %v1259_v30 = vpop.eup %1258  ;;  %905 = vst [vmem:[%s1660_s8 + $0x60] sm:$0xff] %v1257_v27  ;;  %1278 = vrcp.f32 %v811_v24  ;;  %v690_v31 = vpop.f32.mrb[18].mxu1  ;;  %v1069_v61 = vmul.f32 -1.442695, %v687_v50 }
 0x1f3   : > { %v1261_v32 = vpop.eup %1260  ;;  %900 = vst [vmem:[%s1660_s8 + $0x38] sm:$0xff] %v1259_v30  ;;  %1280 = vrcp.f32 %v806_v28  ;;  %v692_v33 = vpop.f32.mrb[19].mxu1  ;;  %v691_v58 = vadd.f32 %v690_v31, %v1636_v37 }
 0x1f4   : > { %v1263_v34 = vpop.eup %1262  ;;  %v812_v35 = vadd.f32 1.0, %v1261_v32  ;;  %1282 = vpow2.f32 %v1064_v25  ;;  %v693_v62 = vadd.f32 %v692_v33, %v1638_v38 }
 0x1f5   : > { %v1265_v39 = vpop.eup %1264  ;;  %v813_v40 = vadd.f32 1.0, %v1263_v34  ;;  %1284 = vpow2.f32 %v1065_v29  ;;  %v1070_v4 = vmul.f32 -1.442695, %v691_v58 }
 0x1f6   : > { %v1267_v42 = vpop.eup %1266  ;;  %906 = vst [vmem:[%s1660_s8 + $0x68] sm:$0xff] %v1265_v39  ;;  %1286 = vrcp.f32 %v812_v35  ;;  %v696_v43 = vpop.f32.mrb[20].mxu1  ;;  %v1071_v8 = vmul.f32 -1.442695, %v693_v62 }
 0x1f7   : > { %v1269_v44 = vpop.eup %1268  ;;  %1288 = vrcp.f32 %v813_v40  ;;  %v814_v45 = vadd.f32 1.0, %v1267_v42  ;;  %v698_v47 = vpop.f32.mrb[21].mxu1  ;;  %v697_v1 = vadd.f32 %v696_v43, %v1636_v37 }
 0x1f8   : > { %v1271_v48 = vpop.eup %1270  ;;  %v815_v49 = vadd.f32 1.0, %v1269_v44  ;;  %1290 = vpow2.f32 %v1066_v36  ;;  %v699_v5 = vadd.f32 %v698_v47, %v1638_v38 }
 0x1f9   : > { %v1273_v51 = vpop.eup %1272  ;;  %1292 = vrcp.f32 %v814_v45  ;;  %v816_v52 = vadd.f32 1.0, %v1271_v48  ;;  %v1072_v37 = vmul.f32 -1.442695, %v697_v1 }
 0x1fa   : > { %v1275_v54 = vpop.eup %1274  ;;  %1294 = vrcp.f32 %v815_v49  ;;  %v817_v55 = vadd.f32 1.0, %v1273_v51  ;;  %v1073_v13 = vmul.f32 -1.442695, %v699_v5 }
 0x1fb   : > { %v1277_v56 = vpop.eup %1276  ;;  %901 = vst [vmem:[%s1660_s8 + $0x40] sm:$0xff] %v1275_v54  ;;  %1296 = vrcp.f32 %v816_v52 }
 0x1fc   : > { %v1279_v59 = vpop.eup %1278  ;;  %1298 = vrcp.f32 %v817_v55  ;;  %v818_v60 = vadd.f32 1.0, %v1277_v56 }
 0x1fd   : > { %v1281_v63 = vpop.eup %1280  ;;  %907 = vst [vmem:[%s1660_s8 + $0x70] sm:$0xff] %v1279_v59  ;;  %1300 = vpow2.f32 %v1067_v53 }
 0x1fe   : > { %v1283_v0 = vpop.eup %1282  ;;  %902 = vst [vmem:[%s1660_s8 + $0x48] sm:$0xff] %v1281_v63  ;;  %1302 = vrcp.f32 %v818_v60 }
 0x1ff   : > { %v1285_v2 = vpop.eup %1284  ;;  %v819_v3 = vadd.f32 1.0, %v1283_v0  ;;  %1304 = vpow2.f32 %v1068_v57 }
 0x200   : > { %v1287_v6 = vpop.eup %1286  ;;  %v820_v7 = vadd.f32 1.0, %v1285_v2  ;;  %1306 = vpow2.f32 %v1069_v61 }
 0x201   : > { %v1289_v9 = vpop.eup %1288  ;;  %908 = vst [vmem:[%s1660_s8 + $0x78] sm:$0xff] %v1287_v6  ;;  %1308 = vrcp.f32 %v819_v3 }
 0x202   : > { %v1291_v10 = vpop.eup %1290  ;;  %909 = vst [vmem:[%s1660_s8 + $0x80] sm:$0xff] %v1289_v9  ;;  %1310 = vrcp.f32 %v820_v7 }
 0x203   : > { %v1293_v11 = vpop.eup %1292  ;;  %v821_v12 = vadd.f32 1.0, %v1291_v10  ;;  %1312 = vpow2.f32 %v1070_v4 }
 0x204   : > { %v1295_v38 = vpop.eup %1294  ;;  %910 = vst [vmem:[%s1660_s8 + $0x88] sm:$0xff] %v1293_v11  ;;  %1314 = vpow2.f32 %v1071_v8 }
 0x205   : > { %v1297_v14 = vpop.eup %1296  ;;  %911 = vst [vmem:[%s1660_s8 + $0x90] sm:$0xff] %v1295_v38  ;;  %1316 = vrcp.f32 %v821_v12 }
 0x206   : > { %v1299_v15 = vpop.eup %1298  ;;  %912 = vst [vmem:[%s1660_s8 + $0x98] sm:$0xff] %v1297_v14  ;;  %1318 = vpow2.f32 %v1072_v37 }
 0x207   : > { %v1301_v16 = vpop.eup %1300  ;;  %913 = vst [vmem:[%s1660_s8 + $0xa0] sm:$0xff] %v1299_v15  ;;  %1320 = vpow2.f32 %v1073_v13 }
 0x208   : > { %v1303_v17 = vpop.eup %1302  ;;  %v822_v18 = vadd.f32 1.0, %v1301_v16 }
 0x209   : > { %v1305_v19 = vpop.eup %1304  ;;  %914 = vst [vmem:[%s1660_s8 + $0xa8] sm:$0xff] %v1303_v17 }
 0x20a   : > { %v1307_v20 = vpop.eup %1306  ;;  %1322 = vrcp.f32 %v822_v18  ;;  %v823_v21 = vadd.f32 1.0, %v1305_v19 }
 0x20b   : > { %v1309_v22 = vpop.eup %1308  ;;  %v824_v23 = vadd.f32 1.0, %v1307_v20 }
 0x20c   : > { %v1311_v24 = vpop.eup %1310  ;;  %915 = vst [vmem:[%s1660_s8 + $0xb0] sm:$0xff] %v1309_v22  ;;  %1324 = vrcp.f32 %v823_v21 }
 0x20d   : > { %v1313_v25 = vpop.eup %1312  ;;  %916 = vst [vmem:[%s1660_s8 + $0xb8] sm:$0xff] %v1311_v24  ;;  %1326 = vrcp.f32 %v824_v23 }
 0x20e   : > { %v1315_v26 = vpop.eup %1314  ;;  %v825_v27 = vadd.f32 1.0, %v1313_v25 }
 0x20f   : > { %v1317_v28 = vpop.eup %1316  ;;  %v826_v29 = vadd.f32 1.0, %v1315_v26 }
 0x210   : > { %v1319_v30 = vpop.eup %1318  ;;  %917 = vst [vmem:[%s1660_s8 + $0xc0] sm:$0xff] %v1317_v28  ;;  %1328 = vrcp.f32 %v825_v27 }
 0x211   : > { %v1321_v31 = vpop.eup %1320  ;;  %1330 = vrcp.f32 %v826_v29  ;;  %v827_v32 = vadd.f32 1.0, %v1319_v30 }
 0x212   : > { %v828_v33 = vadd.f32 1.0, %v1321_v31 }
 0x213   : > { %1332 = vrcp.f32 %v827_v32 }
 0x214   : > { %v1323_v34 = vpop.eup %1322  ;;  %1334 = vrcp.f32 %v828_v33 }
 0x215   : > { %918 = vst [vmem:[%s1660_s8 + $0xc8] sm:$0xff] %v1323_v34 }
 0x216   : > { %v1325_v35 = vpop.eup %1324 }
 0x217   : > { %v1327_v36 = vpop.eup %1326  ;;  %919 = vst [vmem:[%s1660_s8 + $0xd0] sm:$0xff] %v1325_v35 }
 0x218   : > { %920 = vst [vmem:[%s1660_s8 + $0xd8] sm:$0xff] %v1327_v36 }
 0x21a   : > { %v1329_v39 = vpop.eup %1328 }
 0x21b   : > { %v1331_v40 = vpop.eup %1330  ;;  %921 = vst [vmem:[%s1660_s8 + $0xe0] sm:$0xff] %v1329_v39 }
 0x21c   : > { %922 = vst [vmem:[%s1660_s8 + $0xe8] sm:$0xff] %v1331_v40 }
 0x21d   : > { %v1333_v41 = vpop.eup %1332 }
 0x21e   : > { %v1335_v42 = vpop.eup %1334  ;;  %923 = vst [vmem:[%s1660_s8 + $0xf0] sm:$0xff] %v1333_v41 }
 0x21f   : > { %924 = vst [vmem:[%s1660_s8 + $0xf8] sm:$0xff] %v1335_v42 }
 0x220   : > { %1349 = shalt.err (!%p1346_p3)
}
 0x221   : > { %s1350_s25 = scalar_lea.hbm %s1712_s14, 4096  ;;  %s1354_s6 = scalar_lea.hbm %s1766_s5, 8192 }
 0x222   : > { %p1351_p4 = scmp.ne.s32.totalorder %s1712_s14, %s1350_s25  ;;  %p1355_p9 = scmp.lt.u32.totalorder %s1712_s14, %s1766_s5 }
 0x223   : > { %p1356_p10 = scmp.lt.u32.totalorder %s1354_s6, %s1350_s25  ;;  %p1358_p12 = scmp.lt.u32.totalorder %s1350_s25, %s1712_s14 }
 0x224   : > { %p1352_p7 = pnand %p1351_p4, %p1472_p5 }
 0x225   : > { %p1357_p11 = por %p1356_p10, %p1355_p9 }
 0x226   : > { %p1353_p8 = pneg %p1352_p7 }
 0x227   : > { %p1359_p13 = por %p1358_p12, %p1357_p11 }
 0x229   : > { %p1360_p0 = pnand %p1359_p13, %p1353_p8 }
 0x22b   : > { %1363 = shalt.err (!%p1360_p0)
}
 0x22c   : > { %s1402_s8 = smov 256   ;;  %s1403_s9 = smov 16  }
 0x22d   : > { %1166 = dma.vmem_to_hbm [thread:$0]  (%p1472_p5), %s1714_s10, 4096, %s1712_s14, %s1720_s22, %s1402_s8, %s1402_s8, %s1403_s9  }
 0x22e PF: > { %p1172_p1 = scmp.ge.s32.totalorder %s1398_s21, 2  ;;  %s955_s12 = sand.u32 1, %s1386_s18  }
 0x22f   : > { %s956_s13 = scalar_lea.sflag [#allocation3], %s955_s12 }
 0x230   : > { %p1169_p2 = pnand %p1172_p1, %p1476_p6 }
 0x232   : > { %1381 = dma.done.wait (!%p1169_p2), %s956_s13, 4096  }
 0x233   : > { %1383 = vsyncadd (!%p1169_p2), %s956_s13, 4294963200  ;;  %p15_p3 = scmp.ge.s32.totalorder %s1459_s24, 4   ;;  %s1769_s18 = smov %s1390_s19 }
 0x234   : > { %s1770_s19 = smov %s1394_s20  ;;  %s1771_s20 = smov %s1470_s27 }
 0x235   : > { %s1772_s21 = smov %s1459_s24  ;;  %17 = sbr.rel (!%p15_p3) target bundleno = 3 (0x3), region = 75 }
 0x23c   :  { %961 = vsyncpa [#allocation3], 1 }
 0x23d   :  { %963 = vsyncpa [#allocation3 + $0x1], 1 }

</bundles_post_ra>
